<compile_context>
chip_gen: v6e
topology: v6e:2x2x1
jax: 0.10.0
libtpu: 0.0.40
codegen_flags: <defaults>
</compile_context>

<pallas_src>
import functools

import jax
import jax.numpy as jnp
import numpy as np
from jax.experimental import pallas as pl
from jax.experimental.pallas import tpu as pltpu

LANE = 128        # TPU lane width
TN_MAX = 8192     # max gaussians per block (8 rows * 8192 * 4B ~= 256 KiB/block)


def _normal_kernel(packed_ref, out_ref):
    # packed_ref: (8, TN)  rows 0..2 = scaling, rows 3..6 = quaternion, row 7 = pad
    # out_ref:    (3, TN)  normals (rows of the selected rotation-matrix column)
    s0 = packed_ref[0:1, :]
    s1 = packed_ref[1:2, :]
    s2 = packed_ref[2:3, :]

    r = packed_ref[3:4, :]
    x = packed_ref[4:5, :]
    y = packed_ref[5:6, :]
    z = packed_ref[6:7, :]

    # quaternion normalization (matches utils.general_utils.build_rotation: no eps)
    inv_norm = jax.lax.rsqrt(r * r + x * x + y * y + z * z)
    r = r * inv_norm
    x = x * inv_norm
    y = y * inv_norm
    z = z * inv_norm

    # Rotation-matrix columns R[:, :, k] for k = 0, 1, 2
    c0_0 = 1.0 - 2.0 * (y * y + z * z)
    c0_1 = 2.0 * (x * y + r * z)
    c0_2 = 2.0 * (x * z - r * y)

    c1_0 = 2.0 * (x * y - r * z)
    c1_1 = 1.0 - 2.0 * (x * x + z * z)
    c1_2 = 2.0 * (y * z + r * x)

    c2_0 = 2.0 * (x * z + r * y)
    c2_1 = 2.0 * (y * z - r * x)
    c2_2 = 1.0 - 2.0 * (x * x + y * y)

    # torch.argmin(dim=1) tie-break: first minimal index.
    pick0 = jnp.logical_and(s0 <= s1, s0 <= s2)
    pick1 = s1 <= s2

    odt = out_ref.dtype
    # direct row stores (no sublane concat / extra temporary)
    out_ref[0:1, :] = jnp.where(pick0, c0_0, jnp.where(pick1, c1_0, c2_0)).astype(odt)
    out_ref[1:2, :] = jnp.where(pick0, c0_1, jnp.where(pick1, c1_1, c2_1)).astype(odt)
    out_ref[2:3, :] = jnp.where(pick0, c0_2, jnp.where(pick1, c1_2, c2_2)).astype(odt)


def _pick_tile(n):
    """Lane-tile size: big (HBM-bound op) but aim for >= 2 grid steps (v7x megacore)."""
    tn = pl.cdiv(n, 2 * LANE) * LANE   # ~half the array, rounded up to a lane multiple
    return int(max(LANE, min(TN_MAX, tn)))


@functools.partial(jax.jit, static_argnames=("out_dtype",))
def calculate_normal(scaling, rotation, out_dtype=jnp.float32):
    """scaling: (N, 3), rotation: (N, 4) quaternions -> normals (N, 3).

    out_dtype=jnp.bfloat16 halves output HBM traffic (useful on v5e) if the
    consumer tolerates it; math stays in f32 inside the kernel either way.
    """
    n = scaling.shape[0]
    tn = _pick_tile(n)

    # Pack into one channels-first (8, N) slab: rows 0..2 scale, 3..6 quat, 7 pad.
    packed = jnp.concatenate(
        [
            scaling.T.astype(jnp.float32),
            rotation.T.astype(jnp.float32),
            jnp.zeros((1, n), jnp.float32),
        ],
        axis=0,
    )

    out = pl.pallas_call(
        _normal_kernel,
        out_shape=jax.ShapeDtypeStruct((3, n), out_dtype),
        grid_spec=pltpu.PrefetchScalarGridSpec(
            num_scalar_prefetch=0,
            grid=(pl.cdiv(n, tn),),
            in_specs=[pl.BlockSpec((8, tn), lambda i: (0, i))],
            out_specs=pl.BlockSpec((3, tn), lambda i: (0, i)),
        ),
        compiler_params=pltpu.CompilerParams(dimension_semantics=("parallel",)),
    )(packed)

    return out.T  # back to the PyTorch (N, 3) convention


def _reference_normal(scaling, rotation):
    """Pure-JAX reference matching utils.general_utils.build_rotation + gather."""
    q = rotation / jnp.linalg.norm(rotation, axis=1, keepdims=True)
    r, x, y, z = q[:, 0], q[:, 1], q[:, 2], q[:, 3]
    R = jnp.stack(
        [
            1 - 2 * (y * y + z * z), 2 * (x * y - r * z), 2 * (x * z + r * y),
            2 * (x * y + r * z), 1 - 2 * (x * x + z * z), 2 * (y * z - r * x),
            2 * (x * z - r * y), 2 * (y * z + r * x), 1 - 2 * (x * x + y * y),
        ],
        axis=-1,
    ).reshape(-1, 3, 3)
    idx = jnp.argmin(scaling, axis=1)
    return R[jnp.arange(scaling.shape[0]), :, idx]


if __name__ == "__main__":
    key = jax.random.PRNGKey(0)
    k_s, k_r = jax.random.split(key)

    N = 300  # deliberately not a multiple of 128 to exercise the partial final block
    scaling = jax.random.normal(k_s, (N, 3), dtype=jnp.float32)    # gaussians._scaling
    rotation = jax.random.normal(k_r, (N, 4), dtype=jnp.float32)   # gaussians._rotation

    normals = calculate_normal(scaling, rotation)
    normals = jax.block_until_ready(normals)

    ref = jax.block_until_ready(_reference_normal(scaling, rotation))
    np.testing.assert_allclose(np.asarray(normals), np.asarray(ref), rtol=1e-5, atol=1e-5)

    print("KERNEL_OK")
</pallas_src>

<mosaic_0001>
module attributes {stable_mosaic.version = 11 : i64} {
  func.func @_normal_kernel(%arg0: i32, %arg1: memref<8x256xf32, #tpu.memory_space<vmem>>, %arg2: memref<3x256xf32, #tpu.memory_space<vmem>>) attributes {dimension_semantics = [#tpu.dimension_semantics<parallel>], iteration_bounds = array<i64: 2>, scalar_prefetch = 0 : i64, scratch_operands = 0 : i64, tpu.core_type = #tpu.core_type<tc>, window_params = [{transform_indices = @transform_0, window_bounds = array<i64: 8, 256>}, {transform_indices = @transform_1, window_bounds = array<i64: 3, 256>}]} {
    %c0 = arith.constant 0 : index
    %c0_0 = arith.constant 0 : index
    %0 = vector.load %arg1[%c0, %c0_0] : memref<8x256xf32, #tpu.memory_space<vmem>>, vector<1x256xf32>
    %c1 = arith.constant 1 : index
    %c0_1 = arith.constant 0 : index
    %1 = vector.load %arg1[%c1, %c0_1] : memref<8x256xf32, #tpu.memory_space<vmem>>, vector<1x256xf32>
    %c2 = arith.constant 2 : index
    %c0_2 = arith.constant 0 : index
    %2 = vector.load %arg1[%c2, %c0_2] : memref<8x256xf32, #tpu.memory_space<vmem>>, vector<1x256xf32>
    %c3 = arith.constant 3 : index
    %c0_3 = arith.constant 0 : index
    %3 = vector.load %arg1[%c3, %c0_3] : memref<8x256xf32, #tpu.memory_space<vmem>>, vector<1x256xf32>
    %c4 = arith.constant 4 : index
    %c0_4 = arith.constant 0 : index
    %4 = vector.load %arg1[%c4, %c0_4] : memref<8x256xf32, #tpu.memory_space<vmem>>, vector<1x256xf32>
    %c5 = arith.constant 5 : index
    %c0_5 = arith.constant 0 : index
    %5 = vector.load %arg1[%c5, %c0_5] : memref<8x256xf32, #tpu.memory_space<vmem>>, vector<1x256xf32>
    %c6 = arith.constant 6 : index
    %c0_6 = arith.constant 0 : index
    %6 = vector.load %arg1[%c6, %c0_6] : memref<8x256xf32, #tpu.memory_space<vmem>>, vector<1x256xf32>
    %7 = arith.mulf %3, %3 : vector<1x256xf32>
    %8 = arith.mulf %4, %4 : vector<1x256xf32>
    %9 = arith.addf %7, %8 : vector<1x256xf32>
    %10 = arith.mulf %5, %5 : vector<1x256xf32>
    %11 = arith.addf %9, %10 : vector<1x256xf32>
    %12 = arith.mulf %6, %6 : vector<1x256xf32>
    %13 = arith.addf %11, %12 : vector<1x256xf32>
    %14 = math.rsqrt %13 : vector<1x256xf32>
    %15 = arith.mulf %3, %14 : vector<1x256xf32>
    %16 = arith.mulf %4, %14 : vector<1x256xf32>
    %17 = arith.mulf %5, %14 : vector<1x256xf32>
    %18 = arith.mulf %6, %14 : vector<1x256xf32>
    %19 = arith.mulf %17, %17 : vector<1x256xf32>
    %20 = arith.mulf %18, %18 : vector<1x256xf32>
    %21 = arith.addf %19, %20 : vector<1x256xf32>
    %cst = arith.constant 2.000000e+00 : f32
    %22 = vector.broadcast %cst : f32 to vector<1x256xf32>
    %23 = arith.mulf %22, %21 : vector<1x256xf32>
    %cst_7 = arith.constant 1.000000e+00 : f32
    %24 = vector.broadcast %cst_7 : f32 to vector<1x256xf32>
    %25 = arith.subf %24, %23 : vector<1x256xf32>
    %26 = arith.mulf %16, %17 : vector<1x256xf32>
    %27 = arith.mulf %15, %18 : vector<1x256xf32>
    %28 = arith.addf %26, %27 : vector<1x256xf32>
    %cst_8 = arith.constant 2.000000e+00 : f32
    %29 = vector.broadcast %cst_8 : f32 to vector<1x256xf32>
    %30 = arith.mulf %29, %28 : vector<1x256xf32>
    %31 = arith.mulf %16, %18 : vector<1x256xf32>
    %32 = arith.mulf %15, %17 : vector<1x256xf32>
    %33 = arith.subf %31, %32 : vector<1x256xf32>
    %cst_9 = arith.constant 2.000000e+00 : f32
    %34 = vector.broadcast %cst_9 : f32 to vector<1x256xf32>
    %35 = arith.mulf %34, %33 : vector<1x256xf32>
    %36 = arith.mulf %16, %17 : vector<1x256xf32>
    %37 = arith.mulf %15, %18 : vector<1x256xf32>
    %38 = arith.subf %36, %37 : vector<1x256xf32>
    %cst_10 = arith.constant 2.000000e+00 : f32
    %39 = vector.broadcast %cst_10 : f32 to vector<1x256xf32>
    %40 = arith.mulf %39, %38 : vector<1x256xf32>
    %41 = arith.mulf %16, %16 : vector<1x256xf32>
    %42 = arith.mulf %18, %18 : vector<1x256xf32>
    %43 = arith.addf %41, %42 : vector<1x256xf32>
    %cst_11 = arith.constant 2.000000e+00 : f32
    %44 = vector.broadcast %cst_11 : f32 to vector<1x256xf32>
    %45 = arith.mulf %44, %43 : vector<1x256xf32>
    %cst_12 = arith.constant 1.000000e+00 : f32
    %46 = vector.broadcast %cst_12 : f32 to vector<1x256xf32>
    %47 = arith.subf %46, %45 : vector<1x256xf32>
    %48 = arith.mulf %17, %18 : vector<1x256xf32>
    %49 = arith.mulf %15, %16 : vector<1x256xf32>
    %50 = arith.addf %48, %49 : vector<1x256xf32>
    %cst_13 = arith.constant 2.000000e+00 : f32
    %51 = vector.broadcast %cst_13 : f32 to vector<1x256xf32>
    %52 = arith.mulf %51, %50 : vector<1x256xf32>
    %53 = arith.mulf %16, %18 : vector<1x256xf32>
    %54 = arith.mulf %15, %17 : vector<1x256xf32>
    %55 = arith.addf %53, %54 : vector<1x256xf32>
    %cst_14 = arith.constant 2.000000e+00 : f32
    %56 = vector.broadcast %cst_14 : f32 to vector<1x256xf32>
    %57 = arith.mulf %56, %55 : vector<1x256xf32>
    %58 = arith.mulf %17, %18 : vector<1x256xf32>
    %59 = arith.mulf %15, %16 : vector<1x256xf32>
    %60 = arith.subf %58, %59 : vector<1x256xf32>
    %cst_15 = arith.constant 2.000000e+00 : f32
    %61 = vector.broadcast %cst_15 : f32 to vector<1x256xf32>
    %62 = arith.mulf %61, %60 : vector<1x256xf32>
    %63 = arith.mulf %16, %16 : vector<1x256xf32>
    %64 = arith.mulf %17, %17 : vector<1x256xf32>
    %65 = arith.addf %63, %64 : vector<1x256xf32>
    %cst_16 = arith.constant 2.000000e+00 : f32
    %66 = vector.broadcast %cst_16 : f32 to vector<1x256xf32>
    %67 = arith.mulf %66, %65 : vector<1x256xf32>
    %cst_17 = arith.constant 1.000000e+00 : f32
    %68 = vector.broadcast %cst_17 : f32 to vector<1x256xf32>
    %69 = arith.subf %68, %67 : vector<1x256xf32>
    %70 = arith.cmpf ole, %0, %1 : vector<1x256xf32>
    %71 = arith.cmpf ole, %0, %2 : vector<1x256xf32>
    %72 = arith.andi %70, %71 : vector<1x256xi1>
    %73 = arith.cmpf ole, %1, %2 : vector<1x256xf32>
    %74 = arith.select %73, %40, %57 : vector<1x256xi1>, vector<1x256xf32>
    %75 = arith.select %72, %25, %74 : vector<1x256xi1>, vector<1x256xf32>
    %c0_18 = arith.constant 0 : index
    %c0_19 = arith.constant 0 : index
    %76 = vector.load %arg2[%c0_18, %c0_19] : memref<3x256xf32, #tpu.memory_space<vmem>>, vector<1x256xf32>
    tpu.vector_store %arg2[%c0_18, %c0_19], %75 {strides = array<i32>} : memref<3x256xf32, #tpu.memory_space<vmem>>, vector<1x256xf32>,
    %77 = arith.select %73, %47, %62 : vector<1x256xi1>, vector<1x256xf32>
    %78 = arith.select %72, %30, %77 : vector<1x256xi1>, vector<1x256xf32>
    %c1_20 = arith.constant 1 : index
    %c0_21 = arith.constant 0 : index
    %79 = vector.load %arg2[%c1_20, %c0_21] : memref<3x256xf32, #tpu.memory_space<vmem>>, vector<1x256xf32>
    tpu.vector_store %arg2[%c1_20, %c0_21], %78 {strides = array<i32>} : memref<3x256xf32, #tpu.memory_space<vmem>>, vector<1x256xf32>,
    %80 = arith.select %73, %52, %69 : vector<1x256xi1>, vector<1x256xf32>
    %81 = arith.select %72, %35, %80 : vector<1x256xi1>, vector<1x256xf32>
    %c2_22 = arith.constant 2 : index
    %c0_23 = arith.constant 0 : index
    %82 = vector.load %arg2[%c2_22, %c0_23] : memref<3x256xf32, #tpu.memory_space<vmem>>, vector<1x256xf32>
    tpu.vector_store %arg2[%c2_22, %c0_23], %81 {strides = array<i32>} : memref<3x256xf32, #tpu.memory_space<vmem>>, vector<1x256xf32>,
    return
  }
  func.func @transform_0(%arg0: i32) -> (i32, i32) {
    %c0_i32 = arith.constant 0 : i32
    %c0_i32_0 = arith.constant 0 : i32
    return %c0_i32, %arg0 : i32, i32
  }
  func.func @transform_1(%arg0: i32) -> (i32, i32) {
    %c0_i32 = arith.constant 0 : i32
    %c0_i32_0 = arith.constant 0 : i32
    return %c0_i32, %arg0 : i32, i32
  }
}

</mosaic_0001>

<bundles_post_ra>
// kernel: calculate_normal.1
= control target key start
LH: loop header
LB: loop body
LE: loop exit
PB: predicated region body
PF: predicated region fallthrough
CT: control target
= control target key end

     0   :  { %6 = vsyncpa [#allocation3], 0  ;;  %s567_s0 = inlined_call_operand.vmem [shape: f32[8,300], index: 0, kind: input, shape index: {}]   ;;  %s568_s1 = inlined_call_operand.hbm [shape: f32[3,300], index: 1, kind: output, shape index: {}]  }
   0x1   :  { %8 = vsyncpa [#allocation3 + $0x1], 0  ;;  %s434_s6 = smov 0   ;;  %s436_s7 = smov 0  }
   0x2   :  { %s438_s8 = smov 0   ;;  %s440_s9 = smov 0  }
   0x3 LB: > { %s455_s10 = sadd.s32 4294967295, %s421_s9   ;;  %s296_s11 = sadd.s32 4294967294, %s421_s9   ;;  %s421_s9 = sphi %s440_s9, %s578_s9   ;;  %s417_s8 = sphi %s438_s8, %s577_s8   ;;  %s413_s7 = sphi %s436_s7, %s576_s7   ;;  %s409_s6 = sphi %s434_s6, %s575_s6  }
   0x4   : > { %s459_s12 = sadd.s32 1, %s421_s9   ;;  %s47_s13 = sadd.s32 1, %s417_s8 }
   0x5   : > { %s44_s14 = ssub.s32 %s421_s9, %s459_s12  ;;  %p57_p0 = scmp.ne.s32.totalorder %s417_s8, %s413_s7 }
   0x6   : > { %p45_p1 = scmp.eq.s32.totalorder %s44_s14, 0  ;;  %p58_p2 = scmp.eq.s32.totalorder %s455_s10, 1 }
   0x7   : > { %p63_p3 = scmp.ne.s32.totalorder %s413_s7, %s409_s6  ;;  %p64_p4 = scmp.eq.s32.totalorder %s296_s11, 1 }
   0x8   : > { %s470_s15 = scalar_select %p45_p1, %s417_s8, %s47_s13  }
   0x9   : > { %p472_p5 = por %p58_p2, %p57_p0  ;;  %p476_p6 = por %p64_p4, %p63_p3 }
   0xa   : > { %p299_p7 = scmp.ge.s32.totalorder %s421_s9, 1  ;;  %p99_p8 = scmp.lt.s32.totalorder %s421_s9, 3 }
   0xc   : > { %p100_p9 = pnand %p299_p7, %p99_p8 }
   0xd   : > { %s483_s18 = sshll.u32 (!%p100_p9), %s455_s10, 1  ;;  %s120_s19 = sand.u32 (!%p100_p9), 1, %s413_s7  }
   0xe   : > { %103 = sbr.rel (%p100_p9) target bundleno = 86 (0x56), region = 24  ;;  %p128_p10 = scmp.lt.s32.totalorder (!%p100_p9), %s483_s18, 2 }
   0xf   : > { %s300_s25 = sshll.u32 (!%p100_p9), %s120_s19, 3  ;;  %s520_s27 = scalar_lea.sflag (!%p100_p9), [#allocation3], %s120_s19 }
  0x10   : > { %s122_s26 = scalar_lea.vmem (!%p100_p9), [#allocation2], %s300_s25 }
  0x13   : > { %s129_s20 = scalar_select %p128_p10, %s483_s18, 2  ;;  %v203_v19 = vlaneseq }
  0x14   : > { %s225_s28 = ssub.s32 (%p472_p5), 3, %s483_s18 }
  0x15   : > { %s302_s21 = sshll.u32 %s129_s20, 3  ;;  %vm499_vm4 = vcmp.lt.s32.totalorder %v203_v19, 256  ;;  %p226_p11 = scmp.lt.s32.totalorder (%p472_p5), %s225_s28, 2 }
  0x16   : > { %s131_s24 = scalar_lea.vmem %s567_s0, %s302_s21 }
  0x17   : > { %v305_v0 = vld [vmem:[%s131_s24 + $0x3] ss:$8 sm:$0x3]  ;;  %v306_v1 = vld [vmem:[%s131_s24 + $0x4] ss:$8 sm:$0x3] }
  0x18   : > { %v307_v2 = vld [vmem:[%s131_s24 + $0x5] ss:$8 sm:$0x3]  ;;  %v155_v3 = vmul.f32 %v305_v0, %v305_v0  ;;  %v308_v4 = vld [vmem:[%s131_s24 + $0x6] ss:$8 sm:$0x3]  ;;  %v156_v5 = vmul.f32 %v306_v1, %v306_v1 }
  0x19   : > { %v158_v6 = vmul.f32 %v307_v2, %v307_v2  ;;  %v160_v8 = vmul.f32 %v308_v4, %v308_v4  ;;  %v142_v11 = vld [vmem:[%s131_s24] ss:$8 sm:$0x3]  ;;  %v303_v12 = vld [vmem:[%s131_s24 + $0x1] ss:$8 sm:$0x3] }
  0x1a   : > { %v157_v7 = vadd.f32 %v156_v5, %v155_v3  ;;  %v304_v13 = vld [vmem:[%s131_s24 + $0x2] ss:$8 sm:$0x3]  ;;  %vm197_vm0 = vcmp.le.f32.partialorder %v142_v11, %v303_v12 }
  0x1b   : > { %vm198_vm1 = vcmp.le.f32.partialorder %v142_v11, %v304_v13  ;;  %vm200_vm2 = vcmp.le.f32.partialorder %v303_v12, %v304_v13 }
  0x1c   : > { %v159_v9 = vadd.f32 %v158_v6, %v157_v7  ;;  %vm495_vm3 = vmand %vm197_vm0, %vm198_vm1 }
  0x1e   : > { %v161_v10 = vadd.f32 %v160_v8, %v159_v9 }
  0x20   : > { %359 = vrsqrt.f32 %v161_v10 }
  0x2d   : > { %v360_v14 = vpop.eup %359 }
  0x2e   : > { %v163_v15 = vmul.f32 %v360_v14, %v305_v0  ;;  %v164_v16 = vmul.f32 %v360_v14, %v306_v1  ;;  %v165_v17 = vmul.f32 %v360_v14, %v307_v2  ;;  %v166_v18 = vmul.f32 %v360_v14, %v308_v4 }
  0x30   : > { %v167_v20 = vmul.f32 %v165_v17, %v165_v17  ;;  %v168_v21 = vmul.f32 %v166_v18, %v166_v18  ;;  %v172_v22 = vmul.f32 %v165_v17, %v164_v16  ;;  %v173_v23 = vmul.f32 %v166_v18, %v163_v15 }
  0x31   : > { %v176_v24 = vmul.f32 %v166_v18, %v164_v16  ;;  %v177_v25 = vmul.f32 %v165_v17, %v163_v15  ;;  %v182_v26 = vmul.f32 %v164_v16, %v164_v16  ;;  %v186_v27 = vmul.f32 %v166_v18, %v165_v17 }
  0x32   : > { %v169_v28 = vadd.f32 %v168_v21, %v167_v20  ;;  %v180_v29 = vsub.f32 %v172_v22, %v173_v23  ;;  %v174_v30 = vadd.f32 %v173_v23, %v172_v22  ;;  %v187_v31 = vmul.f32 %v164_v16, %v163_v15 }
  0x33   : > { %v190_v32 = vadd.f32 %v177_v25, %v176_v24  ;;  %v183_v33 = vadd.f32 %v182_v26, %v168_v21  ;;  %v178_v34 = vsub.f32 %v176_v24, %v177_v25  ;;  %v194_v35 = vadd.f32 %v182_v26, %v167_v20 }
  0x34   : > { %v170_v36 = vmul.f32 2.0, %v169_v28  ;;  %v181_v37 = vmul.f32 2.0, %v180_v29  ;;  %v192_v38 = vsub.f32 %v186_v27, %v187_v31  ;;  %v188_v43 = vadd.f32 %v187_v31, %v186_v27 }
  0x35   : > { %v191_v39 = vmul.f32 2.0, %v190_v32  ;;  %v184_v42 = vmul.f32 2.0, %v183_v33  ;;  %v175_v45 = vmul.f32 2.0, %v174_v30  ;;  %v195_v47 = vmul.f32 2.0, %v194_v35 }
  0x36   : > { %v171_v44 = vsub.f32 1.0, %v170_v36  ;;  %v193_v46 = vmul.f32 2.0, %v192_v38  ;;  %v179_v50 = vmul.f32 2.0, %v178_v34  ;;  %v189_v51 = vmul.f32 2.0, %v188_v43 }
  0x37   : > { %v201_v48 = vsel %vm200_vm2, %v181_v37, %v191_v39  ;;  %v185_v49 = vsub.f32 1.0, %v184_v42  ;;  %v196_v53 = vsub.f32 1.0, %v195_v47  ;;  %223 = sbr.rel (!%p472_p5) target bundleno = 86 (0x56), region = 28 }
  0x38   : > { %v202_v52 = vsel %vm495_vm3, %v171_v44, %v201_v48 }
  0x39   : > { %207 = vst.msk [vmem:[%s122_s26] ss:$4 sm:$0x3] %vm499_vm4, %v202_v52  ;;  %v208_v54 = vsel %vm200_vm2, %v185_v49, %v193_v46  ;;  %v212_v56 = vsel %vm200_vm2, %v189_v51, %v196_v53 }
  0x3a   : > { %v209_v55 = vsel %vm495_vm3, %v175_v45, %v208_v54  ;;  %v213_v57 = vsel %vm495_vm3, %v179_v50, %v212_v56 }
  0x3b   : > { %309 = vst.msk [vmem:[%s122_s26 + $0x1] ss:$4 sm:$0x3] %vm499_vm4, %v209_v55  ;;  %310 = vst.msk [vmem:[%s122_s26 + $0x2] ss:$4 sm:$0x3] %vm499_vm4, %v213_v57 }
  0x3c   : > { %s580_s28 = smov (!%p226_p11, %s225_s28), 2 }
  0x3d   : > { %s525_s29 = sshll.u32 %s580_s28, 6 }
  0x3e   : > { %s230_s30 = ssub.s32 128, %s525_s29 }
  0x3f   : > { %231 = vsyncadd %s520_s27, %s230_s30  ;;  %p314_p12 = scmp.ne.s32.totalorder %s525_s29, 0  ;;  %s320_s2 = sshll.u32 %s455_s10, 7 }
  0x40   : > { %s234_s5 = scalar_lea.hbm %s568_s1, %s320_s2  ;;  %s237_s11 = sshll.u32 %s122_s26, 4  ;;  %s238_s11 = int_to_ptr.vmem [resolvable:$true] %s237_s11 }
  0x41   : > { %s361_s13 = scalar_lea.vmem %s238_s11, %s525_s29  ;;  %s423_s14 = smov [#allocation2]  }
  0x42   : > { %p362_p13 = scmp.ne.s32.totalorder %s238_s11, %s361_s13  ;;  %s365_s16 = sshll.u32 %s423_s14, 4  ;;  %s366_s16 = int_to_ptr.vmem [resolvable:$false] %s365_s16 }
  0x43   : > { %s367_s18 = scalar_lea.vmem %s366_s16, 256  ;;  %p368_p2 = scmp.lt.s32.totalorder %s238_s11, %s366_s16 }
  0x44   : > { %p363_p0 = pnand %p362_p13, %p314_p12  ;;  %p369_p3 = scmp.lt.s32.totalorder %s367_s18, %s361_s13 }
  0x46   : > { %p364_p1 = pneg %p363_p0  ;;  %p370_p4 = por %p369_p3, %p368_p2 }
  0x48   : > { %p371_p5 = pnand %p370_p4, %p364_p1 }
  0x4a   : > { %374 = shalt.err (!%p371_p5)
}
  0x4b   : > { %s375_s10 = scalar_lea.hbm %s234_s5, %s525_s29  ;;  %s379_s21 = scalar_lea.hbm %s568_s1, 192 }
  0x4c   : > { %p376_p7 = scmp.ne.s32.totalorder %s234_s5, %s375_s10  ;;  %p380_p10 = scmp.lt.s32.totalorder %s234_s5, %s568_s1 }
  0x4d   : > { %p381_p11 = scmp.lt.s32.totalorder %s379_s21, %s375_s10 }
  0x4e   : > { %p377_p8 = pnand %p376_p7, %p314_p12 }
  0x4f   : > { %p382_p13 = por %p381_p11, %p380_p10 }
  0x50   : > { %p378_p9 = pneg %p377_p8 }
  0x52   : > { %p383_p0 = pnand %p382_p13, %p378_p9 }
  0x54   : > { %386 = shalt.err (!%p383_p0)
}
  0x55   : > { %240 = dma.vmem_to_hbm [thread:$0]  (%p314_p12), %s238_s11, %s525_s29, %s234_s5, %s520_s27  }
  0x56 PF: > { %p326_p1 = scmp.ge.s32.totalorder %s421_s9, 2  ;;  %s249_s24 = sand.u32 1, %s409_s6  }
  0x57   : > { %s250_s25 = scalar_lea.sflag [#allocation3], %s249_s24 }
  0x58   : > { %p323_p2 = pnand %p326_p1, %p476_p6 }
  0x5a   : > { %p324_p3 = pneg %p323_p2 }
  0x5c   : > { %404 = dma.done.wait (%p324_p3), %s250_s25, 128  }
  0x5d   : > { %406 = vsyncadd (%p324_p3), %s250_s25, 4294967168  ;;  %p11_p4 = scmp.ge.s32.totalorder %s459_s12, 4   ;;  %s575_s6 = smov %s413_s7 }
  0x5e   : > { %s576_s7 = smov %s417_s8  ;;  %s577_s8 = smov %s470_s15 }
  0x5f   : > { %s578_s9 = smov %s459_s12  ;;  %13 = sbr.rel (!%p11_p4) target bundleno = 3 (0x3), region = 67 }
  0x64   :  { %255 = vsyncpa [#allocation3], 1 }
  0x65   :  { %257 = vsyncpa [#allocation3 + $0x1], 1 }

</bundles_post_ra>
